<compile_context>
chip_gen: v7x
topology: tpu7x:2x2x1
jax: 0.10.0
libtpu: 0.0.40
codegen_flags: <defaults>
</compile_context>

<pallas_src>
import functools

import jax
import jax.numpy as jnp
from jax.experimental import pallas as pl
from jax.experimental.pallas import tpu as pltpu

_NEG_LARGE = -1e30  # finite "-inf" so exp() underflows cleanly to 0


def _fused_heads_kernel(x_ref, w_ref, b_ref, out_ref, *, action_size):
    """One fused matmul for both heads + log_softmax + tanh.

    x_ref:   (B, D)      bf16 flattened observations
    w_ref:   (D, Npad)   bf16 fused weights: [:, :A]=policy, [:, A]=value, rest 0
    b_ref:   (1, Npad)   f32 fused biases (same layout)
    out_ref: (B, Npad)   f32 output slab: [:, :A]=log_pi, [:, A:]=tanh(v) bcast
    """
    # Single MXU pass, bf16 operands, f32 accumulation.
    z = jnp.dot(x_ref[...], w_ref[...], preferred_element_type=jnp.float32)
    z = z + b_ref[...]                                   # (B, Npad) f32

    col = jax.lax.broadcasted_iota(jnp.int32, z.shape, 1)
    is_pi = col < action_size                            # policy columns
    is_v = col == action_size                            # value column

    # ---- policy: log_softmax restricted to the first `action_size` lanes ----
    logits = jnp.where(is_pi, z, _NEG_LARGE)
    m = jnp.max(logits, axis=1, keepdims=True)           # finite (real logits)
    shifted = logits - m
    lse = jnp.log(jnp.sum(jnp.exp(shifted), axis=1, keepdims=True))
    logp = shifted - lse                                 # (B, Npad)

    # ---- value: extract column A via masked cross-lane sum, tanh ----
    v = jnp.sum(jnp.where(is_v, z, 0.0), axis=1, keepdims=True)   # (B, 1)
    v = jnp.tanh(v)

    # Pack both results into one lane-dense slab (policy lanes keep log_pi,
    # all padded lanes carry tanh(v); wrapper slices them apart).
    out_ref[...] = jnp.where(is_pi, logp, v).astype(out_ref.dtype)


@jax.jit
def linear_model_forward(s, w_pi, b_pi, w_v, b_v):
    """Equivalent of LinearModel.forward.

    s:     (B, H, W) float32
    w_pi:  (D, A), b_pi: (A,)
    w_v:   (D, 1), b_v:  (1,)
    returns (log_pi (B, A), v (B, 1))
    """
    B = s.shape[0]
    x = s.reshape(B, -1)                                  # s.view(B, -1)
    D = x.shape[1]
    A = w_pi.shape[1]

    n_fused = A + 1                                       # policy cols + value col
    n_pad = max(128, -(-n_fused // 128) * 128)            # lane-dense output width

    # Fuse + pad weights/biases in the wrapper (cheap, jit-fused with the cast).
    w = jnp.concatenate([w_pi, w_v.reshape(D, 1)], axis=1)
    w = jnp.pad(w, ((0, 0), (0, n_pad - n_fused)))
    b = jnp.concatenate([b_pi.reshape(A), b_v.reshape(1)], axis=0).reshape(1, n_fused)
    b = jnp.pad(b, ((0, 0), (0, n_pad - n_fused)))

    x_bf = x.astype(jnp.bfloat16)                         # bf16 matmul operands
    w_bf = w.astype(jnp.bfloat16)
    b_f32 = b.astype(jnp.float32)                         # f32 epilogue inputs

    # Tiny problem: single grid point, every operand is one full VMEM block.
    def full(shape):
        return pl.BlockSpec(shape, lambda: (0,) * len(shape),
                            memory_space=pltpu.VMEM)

    out = pl.pallas_call(
        functools.partial(_fused_heads_kernel, action_size=A),
        out_shape=jax.ShapeDtypeStruct((B, n_pad), jnp.float32),
        grid=(),
        in_specs=[
            full((B, D)),
            full((D, n_pad)),
            full((1, n_pad)),
        ],
        out_specs=full((B, n_pad)),
    )(x_bf, w_bf, b_f32)

    log_pi = out[:, :A]
    v = out[:, A:A + 1]
    return log_pi, v


def init_params(key, observation_size, action_space_size):
    """Deterministic parameter init (PyTorch nn.Linear-style uniform bounds)."""
    H, W = observation_size
    D = H * W
    k_wpi, k_bpi, k_wv, k_bv = jax.random.split(key, 4)
    bound = 1.0 / jnp.sqrt(jnp.float32(D))
    w_pi = jax.random.uniform(k_wpi, (D, action_space_size), jnp.float32,
                              -bound, bound)
    b_pi = jax.random.uniform(k_bpi, (action_space_size,), jnp.float32,
                              -bound, bound)
    w_v = jax.random.uniform(k_wv, (D, 1), jnp.float32, -bound, bound)
    b_v = jax.random.uniform(k_bv, (1,), jnp.float32, -bound, bound)
    return w_pi, b_pi, w_v, b_v


if __name__ == "__main__":
    key = jax.random.PRNGKey(0)
    k_params, k_input = jax.random.split(key)

    observation_size = (4, 16)   # -> D = 64
    action_space_size = 16
    batch = 8

    w_pi, b_pi, w_v, b_v = init_params(k_params, observation_size,
                                       action_space_size)
    s = jax.random.normal(k_input, (batch,) + observation_size, jnp.float32)

    log_pi, v = linear_model_forward(s, w_pi, b_pi, w_v, b_v)
    jax.block_until_ready((log_pi, v))

    # Sanity checks.
    assert log_pi.shape == (batch, action_space_size)
    assert v.shape == (batch, 1)

    x = s.reshape(batch, -1)

    # (1) Tight check against a reference using the same bf16-operand matmul.
    xb = x.astype(jnp.bfloat16)
    ref_logits_bf = jnp.dot(xb, w_pi.astype(jnp.bfloat16),
                            preferred_element_type=jnp.float32) + b_pi
    ref_logpi_bf = jax.nn.log_softmax(ref_logits_bf, axis=1)
    ref_v_bf = jnp.tanh(jnp.dot(xb, w_v.astype(jnp.bfloat16),
                                preferred_element_type=jnp.float32) + b_v)
    assert jnp.allclose(log_pi, ref_logpi_bf, atol=1e-3), "log_pi (bf16 ref) mismatch"
    assert jnp.allclose(v, ref_v_bf, atol=1e-3), "v (bf16 ref) mismatch"

    # (2) Loose check against the pure-f32 reference (bf16 operands ~1e-2 rel).
    ref_logpi_f32 = jax.nn.log_softmax(x @ w_pi + b_pi, axis=1)
    ref_v_f32 = jnp.tanh(x @ w_v + b_v)
    assert jnp.allclose(log_pi, ref_logpi_f32, atol=5e-2), "log_pi (f32 ref) mismatch"
    assert jnp.allclose(v, ref_v_f32, atol=5e-2), "v (f32 ref) mismatch"

    print("KERNEL_OK")
</pallas_src>

<mosaic_0001>
module attributes {stable_mosaic.version = 11 : i64} {
  func.func @_fused_heads_kernel(%arg0: memref<8x64xbf16, #tpu.memory_space<vmem>>, %arg1: memref<64x128xbf16, #tpu.memory_space<vmem>>, %arg2: memref<1x128xf32, #tpu.memory_space<vmem>>, %arg3: memref<8x128xf32, #tpu.memory_space<vmem>>) attributes {dimension_semantics = [], scalar_prefetch = 0 : i64, scratch_operands = 0 : i64, tpu.core_type = #tpu.core_type<tc>} {
    %c0 = arith.constant 0 : index
    %c0_0 = arith.constant 0 : index
    %0 = vector.load %arg0[%c0, %c0_0] : memref<8x64xbf16, #tpu.memory_space<vmem>>, vector<8x64xbf16>
    %c0_1 = arith.constant 0 : index
    %c0_2 = arith.constant 0 : index
    %1 = vector.load %arg1[%c0_1, %c0_2] : memref<64x128xbf16, #tpu.memory_space<vmem>>, vector<64x128xbf16>
    %cst = arith.constant dense<0.000000e+00> : vector<8x128xf32>
    %2 = tpu.matmul %0, %1, %cst {dimension_numbers = #tpu.dot_dimension_numbers<[1], [0], [0], [1], [0, 0, 1, 1], [], []>} : vector<8x64xbf16>, vector<64x128xbf16>, vector<8x128xf32> -> vector<8x128xf32>
    %c0_3 = arith.constant 0 : index
    %c0_4 = arith.constant 0 : index
    %3 = vector.load %arg2[%c0_3, %c0_4] : memref<1x128xf32, #tpu.memory_space<vmem>>, vector<1x128xf32>
    %4 = vector.broadcast %3 : vector<1x128xf32> to vector<8x128xf32>
    %5 = arith.addf %2, %4 : vector<8x128xf32>
    %6 = tpu.iota {dimensions = array<i32: 1>} : vector<8x128xi32>
    %c16_i32 = arith.constant 16 : i32
    %7 = vector.broadcast %c16_i32 : i32 to vector<8x128xi32>
    %8 = arith.cmpi slt, %6, %7 : vector<8x128xi32>
    %c16_i32_5 = arith.constant 16 : i32
    %9 = vector.broadcast %c16_i32_5 : i32 to vector<8x128xi32>
    %10 = arith.cmpi eq, %6, %9 : vector<8x128xi32>
    %cst_6 = arith.constant -1.000000e+30 : f32
    %11 = vector.broadcast %cst_6 : f32 to vector<8x128xf32>
    %12 = arith.select %8, %5, %11 : vector<8x128xi1>, vector<8x128xf32>
    %cst_7 = arith.constant dense<0xFF800000> : vector<8xf32>
    %13 = vector.multi_reduction <maximumf>, %12, %cst_7 [1] : vector<8x128xf32> to vector<8xf32>
    %14 = vector.shape_cast %13 : vector<8xf32> to vector<8x1xf32>
    %15 = vector.broadcast %14 : vector<8x1xf32> to vector<8x128xf32>
    %16 = arith.subf %12, %15 : vector<8x128xf32>
    %17 = math.exp %16 : vector<8x128xf32>
    %cst_8 = arith.constant dense<0.000000e+00> : vector<8xf32>
    %18 = vector.multi_reduction <add>, %17, %cst_8 [1] : vector<8x128xf32> to vector<8xf32>
    %19 = vector.shape_cast %18 : vector<8xf32> to vector<8x1xf32>
    %20 = math.log %19 : vector<8x1xf32>
    %21 = vector.broadcast %20 : vector<8x1xf32> to vector<8x128xf32>
    %22 = arith.subf %16, %21 : vector<8x128xf32>
    %cst_9 = arith.constant 0.000000e+00 : f32
    %23 = vector.broadcast %cst_9 : f32 to vector<8x128xf32>
    %24 = arith.select %10, %5, %23 : vector<8x128xi1>, vector<8x128xf32>
    %cst_10 = arith.constant dense<0.000000e+00> : vector<8xf32>
    %25 = vector.multi_reduction <add>, %24, %cst_10 [1] : vector<8x128xf32> to vector<8xf32>
    %26 = vector.shape_cast %25 : vector<8xf32> to vector<8x1xf32>
    %27 = math.tanh %26 : vector<8x1xf32>
    %28 = vector.shape_cast %27 : vector<8x1xf32> to vector<8x1xf32>
    %29 = vector.broadcast %28 : vector<8x1xf32> to vector<8x128xf32>
    %30 = arith.select %8, %22, %29 : vector<8x128xi1>, vector<8x128xf32>
    %c0_11 = arith.constant 0 : index
    %c0_12 = arith.constant 0 : index
    %31 = vector.load %arg3[%c0_11, %c0_12] : memref<8x128xf32, #tpu.memory_space<vmem>>, vector<8x128xf32>
    tpu.vector_store %arg3[%c0_11, %c0_12], %30 {strides = array<i32>} : memref<8x128xf32, #tpu.memory_space<vmem>>, vector<8x128xf32>,
    return
  }
}

</mosaic_0001>

<bundles_post_ra>
// kernel: linear_model_forward.1
= control target key start
LH: loop header
LB: loop body
LE: loop exit
PB: predicated region body
PF: predicated region fallthrough
CT: control target
= control target key end

     0   :  { %v159_v0 = vmov 0.0   ;;  %vm160_vm0 = vmmov 0   ;;  %vm55_vm1 = vcmask 523264   ;;  %v99_v6 = vlaneseq  ;;  %s204_s1 = inlined_call_operand.vmem [shape: bf16[64,128], index: 1, kind: input, shape index: {}]   ;;  %s205_s0 = inlined_call_operand.vmem [shape: bf16[8,64], index: 0, kind: input, shape index: {}]   ;;  %s206_s2 = inlined_call_operand.vmem [shape: f32[1,128], index: 2, kind: input, shape index: {}]   ;;  %s207_s3 = inlined_call_operand.vmem [shape: f32[8,128], index: 3, kind: output, shape index: {}]  }
   0x1   :  { %135 = vmatprep.subr.bf16.mxu0 %v159_v0  ;;  %v149_v1 = vld [vmem:[%s204_s1] sm:$0xff]   ;;  %143 = vmatprep.mubr.msk.bf16.mxu0 %vm160_vm0, %v159_v0  ;;  %v150_v2 = vld [vmem:[%s204_s1 + $0x8] sm:$0xff]   ;;  %v151_v3 = vld [vmem:[%s204_s1 + $0x10] sm:$0xff]  }
   0x2   :  { %136 = vmatpush3.bf16.msra.mxu0 %v149_v1  ;;  %v152_v4 = vld [vmem:[%s204_s1 + $0x18] sm:$0xff]   ;;  %v15_v5 = vld [vmem:[%s205_s0] sm:$0xf]  ;;  %v100_v7 = vand.u32 127, %v99_v6 }
   0x3   :  { %137 = vmatprep.subr.bf16.mxu0 %v159_v0  ;;  %v124_v8 = vld [vmem:[%s206_s2] ss:$0 sm:$0xff] }
   0x4   :  { %vm102_vm2 = vcmp.eq.s32.totalorder %v100_v7, 16  ;;  %vm101_vm3 = vcmp.lt.s32.totalorder %v100_v7, 16 }
   0x6   :  { %138 = vmatpush3.bf16.msra.mxu0 %v150_v2 }
   0x7   :  { %139 = vmatprep.subr.bf16.mxu0 %v159_v0 }
   0xa   :  { %140 = vmatpush3.bf16.msra.mxu0 %v151_v3 }
   0xb   :  { %141 = vmatprep.subr.bf16.mxu0 %v159_v0 }
   0xe   :  { %142 = vmatpush3.bf16.msra.mxu0 %v152_v4 }
  0x11   :  { %144 = vmatmul.mubr.msk.bf16.vlgmr.msra.gmra.mrb[0].mxu0 %vm55_vm1, %v15_v5 }
  0xe4   :  { %v93_v9 = vpop.f32.mrb[0].mxu0 }
  0xe5   :  { %v94_v10 = vadd.f32 %v124_v8, %v93_v9  ;;  %v145_v11 = vpop.f32.mrb[1].mxu0 }
  0xe6   :  { %v96_v12 = vpop.f32.mrb[2].mxu0 }
  0xe7   :  { %v146_v13 = vpop.f32.mrb[3].mxu0  ;;  %v114_v14 = vsel %vm102_vm2, %v94_v10, 0.0  ;;  %v103_v15 = vsel %vm101_vm3, %v94_v10, -1e+30 }
  0xe8   :  { %115 = vadd.xlane.f32.xlu1 %v114_v14  ;;  %104 = vmax.xlane.f32.xlu0 %v103_v15 }
 0x175   :  { %v105_v16 = vpop.xlane.xlu0 %104  ;;  %v116_v21 = vpop.xlane.xlu1 %115 }
 0x176   :  { %v106_v17 = vsub.f32 %v103_v15, %v105_v16 }
 0x178   :  { %v107_v18 = vmul.f32 1.442695, %v106_v17 }
 0x17a   :  { %153 = vpow2.f32 %v107_v18 }
 0x184   :  { %v154_v19 = vpop.eup %153 }
 0x185   :  { %109 = vadd.xlane.f32.xlu0 %v154_v19 }
 0x212   :  { %v110_v20 = vpop.xlane.xlu0 %109 }
 0x213   :  { %155 = vlog2.f32 %v110_v20 }
 0x214   :  { %157 = vtanh.f32 %v116_v21 }
 0x21d   :  { %v156_v22 = vpop.eup %155 }
 0x21e   :  { %v112_v23 = vmul.f32 0.6931472, %v156_v22  ;;  %v158_v25 = vpop.eup %157 }
 0x220   :  { %v113_v24 = vsub.f32 %v106_v17, %v112_v23 }
 0x222   :  { %v118_v26 = vsel %vm101_vm3, %v113_v24, %v158_v25 }
 0x223   :  { %119 = vst [vmem:[%s207_s3] sm:$0xff] %v118_v26 }

</bundles_post_ra>
